<compile_context>
chip_gen: v5e
topology: v5e:2x2
jax: 0.10.0
libtpu: 0.0.40
codegen_flags: <defaults>
</compile_context>

<pallas_src>
import functools

import jax
import jax.numpy as jnp
from jax import lax
from jax.experimental import pallas as pl
from jax.experimental.pallas import tpu as pltpu


def _stein_kernel(theta0_ref, x_ref, wcat_ref, b1_ref, diag_ref, out_ref, *,
                  const, H):
    # x_ref:    [TN, D]    batch tile (rows on sublanes, D on lanes)
    # wcat_ref: [Rp, D]    stacked [W1 (H rows); W2^T (H rows); b2 (1 row); 0-pad]
    # b1_ref:   [H, 1]     hidden bias (f32)
    # diag_ref: [H, 1]     diag(W1 @ W2), hoisted to the wrapper (f32)
    # out_ref:  [1, TN]    lane-dense Stein values for this tile (f32)
    x = x_ref[...]

    # Single fused x-contraction on the MXU (batch on the lane axis):
    #   big[r, n] = sum_d Wcat[r, d] * x[n, d]
    big = lax.dot_general(wcat_ref[...], x, (((1,), (1,)), ((), ())),
                          preferred_element_type=jnp.float32)      # [Rp, TN] f32

    z = big[0:H, :] + b1_ref[...]          # W1 x + b1              [H, TN]
    xw2t = big[H:2 * H, :]                 # W2^T x                 [H, TN]
    xb2 = big[2 * H:2 * H + 1, :]          # <b2, x>                [1, TN]

    t = jnp.tanh(z)                                                  # EUP
    # div phi + <W2 tanh(z), -x>, combined in one elementwise block + one
    # cross-sublane reduction (XLU):
    r = diag_ref[...] * (1.0 - t * t) - t * xw2t                     # [H, TN]
    s = jnp.sum(r, axis=0, keepdims=True)                            # [1, TN]

    theta0 = theta0_ref[0]
    out_ref[...] = (theta0 + const * (s - xb2)).astype(out_ref.dtype)


def stein_forward(x, theta0, w1, b1, w2, b2, *, const=1.0, tile_n=8192):
    """x: [N, D]; w1: [H, D]; b1: [H]; w2: [D, H]; b2: [D]; theta0: [1] -> [N, 1].

    x may be float32 or bfloat16; the fused matmul runs in x.dtype with f32
    accumulation, all remaining math is f32.
    """
    N, D = x.shape
    H = w1.shape[0]
    assert tile_n % 128 == 0, "tile_n must be a multiple of 128"

    n128 = ((N + 127) // 128) * 128
    tn = min(tile_n, n128)
    # Keep >= 2 grid steps for non-tiny inputs so the "parallel" grid axis can
    # shard across both TensorCores on v7x.
    if tn == n128 and n128 >= 2048:
        tn = max(128, (((n128 // 2) + 127) // 128) * 128)
    grid = -(-N // tn)        # cdiv
    n_out = grid * tn

    # No full-array zero-pad copy: ragged last x blocks are read-clamped by the
    # Pallas pipeline; the undefined tail rows feed no accumulation and are
    # sliced off below.  Only the tiny single-tile case (tn > N) pads.
    if tn > N:
        x = jnp.concatenate([x, jnp.zeros((tn - N, D), x.dtype)], axis=0)

    # Parameter layout prep (plain JAX glue, runs once).
    cdt = x.dtype                                    # matmul-operand dtype
    w1f = jnp.asarray(w1, jnp.float32)               # [H, D]
    w2f = jnp.asarray(w2, jnp.float32)               # [D, H]
    r_rows = 2 * H + 1
    r_pad = ((r_rows + 7) // 8) * 8
    # Fused x-contracting operand: [W1; W2^T; b2; zero pad]  -> [Rp, D]
    wcat = jnp.concatenate(
        [w1f, w2f.T, jnp.asarray(b2, jnp.float32).reshape(1, D),
         jnp.zeros((r_pad - r_rows, D), jnp.float32)], axis=0).astype(cdt)
    b1c = jnp.asarray(b1, jnp.float32).reshape(H, 1)
    # Hoisted grid-invariant divergence weights: diag_h = sum_d W1[h,d] W2[d,h].
    diag = jnp.sum(w1f * w2f.T, axis=1).reshape(H, 1)
    theta0 = jnp.asarray(theta0, jnp.float32).reshape(1)

    # Scoped-VMEM budget: double-buffered x tile (lane-padded D->128) plus f32
    # [~2H, tn] intermediates; clamp inside v7x's 64 MiB physical VMEM.
    itemsize = jnp.dtype(cdt).itemsize
    vmem_est = (2 * tn * 128 * itemsize          # x double buffer
                + 2 * 8 * tn * 4                 # out double buffer
                + 8 * r_pad * tn * 4             # in-kernel f32 temporaries
                + (1 << 20))
    vmem_limit = int(min(max(vmem_est, 32 << 20), 56 << 20))

    kernel = functools.partial(_stein_kernel, const=float(const), H=H)
    out = pl.pallas_call(
        kernel,
        out_shape=jax.ShapeDtypeStruct((1, n_out), jnp.float32),
        grid_spec=pltpu.PrefetchScalarGridSpec(
            num_scalar_prefetch=0,
            grid=(grid,),
            in_specs=[
                pl.BlockSpec(memory_space=pltpu.MemorySpace.SMEM),  # theta0 (scalar)
                # TODO(synk): on v5e try pipeline_mode=pl.Buffered(3) here if DMA
                # is still exposed at large tn.
                pl.BlockSpec((tn, D), lambda i: (i, 0)),            # x tile
                pl.BlockSpec((r_pad, D), lambda i: (0, 0)),         # [W1;W2^T;b2]
                pl.BlockSpec((H, 1), lambda i: (0, 0)),             # b1
                pl.BlockSpec((H, 1), lambda i: (0, 0)),             # diag
            ],
            out_specs=pl.BlockSpec((1, tn), lambda i: (0, i)),      # lane-dense out
        ),
        compiler_params=pltpu.CompilerParams(
            dimension_semantics=("parallel",),
            vmem_limit_bytes=vmem_limit),
    )(theta0, x, wcat, b1c, diag)

    return out.reshape(n_out, 1)[:N]


def _reference(x, theta0, w1, b1, w2, b2, const):
    # pure-JAX reference of the same math (for a correctness check)
    x = x.astype(jnp.float32)
    z = x @ w1.T + b1[None, :]
    t = jnp.tanh(z)
    phi = t @ w2.T + b2[None, :]
    diag = jnp.sum(w1.T * w2, axis=0)                          # [H]
    div = jnp.sum((1.0 - t * t) * diag[None, :], axis=1, keepdims=True)
    inner = jnp.sum(phi * (-x), axis=1, keepdims=True)
    return theta0.reshape(()) + const * (div + inner)


if __name__ == "__main__":
    N, D, H = 300, 16, 32          # N=300: not a multiple of 128 -> exercises tail handling
    start_theta_0 = 0.5
    const = 1.0

    key = jax.random.PRNGKey(0)
    kx, k1, k2, kb1, kb2 = jax.random.split(key, 5)
    x = jax.random.normal(kx, (N, D), dtype=jnp.float32)

    # deterministic "network" parameters (shapes implied by SteinLayer's MLP)
    w1 = 0.1 * jax.random.normal(k1, (H, D), dtype=jnp.float32)
    b1 = 0.01 * jax.random.normal(kb1, (H,), dtype=jnp.float32)
    w2 = 0.1 * jax.random.normal(k2, (D, H), dtype=jnp.float32)
    b2 = 0.01 * jax.random.normal(kb2, (D,), dtype=jnp.float32)
    theta0 = jnp.array([start_theta_0], dtype=jnp.float32)

    ref = _reference(x, theta0, w1, b1, w2, b2, const)

    # Default-tile path (single 384-row tile, tiny tail pad).
    out = jax.block_until_ready(
        stein_forward(x, theta0, w1, b1, w2, b2, const=const))
    assert out.shape == (N, 1)
    assert jnp.allclose(out, ref, atol=5e-4, rtol=5e-4), "f32 mismatch vs reference"

    # Multi-tile ragged path: tile_n=128 -> 3 grid steps, last block read-clamped.
    out_mt = jax.block_until_ready(
        stein_forward(x, theta0, w1, b1, w2, b2, const=const, tile_n=128))
    assert out_mt.shape == (N, 1)
    assert jnp.allclose(out_mt, ref, atol=5e-4, rtol=5e-4), "multi-tile mismatch"

    # Larger N exercising the grid>=2 split (no pad copy, ragged last block).
    N2 = 4000
    x2 = jax.random.normal(jax.random.PRNGKey(1), (N2, D), dtype=jnp.float32)
    ref2 = _reference(x2, theta0, w1, b1, w2, b2, const)
    out2 = jax.block_until_ready(
        stein_forward(x2, theta0, w1, b1, w2, b2, const=const))
    assert out2.shape == (N2, 1)
    assert jnp.allclose(out2, ref2, atol=5e-4, rtol=5e-4), "large-N mismatch"

    # bf16 input-streaming path: bf16 fused matmul, f32 accumulation/math.
    out_bf16 = jax.block_until_ready(
        stein_forward(x.astype(jnp.bfloat16), theta0, w1, b1, w2, b2,
                      const=const))
    assert out_bf16.shape == (N, 1)
    assert jnp.allclose(out_bf16, ref, atol=1e-1, rtol=1e-1), "bf16 mismatch vs reference"

    print("KERNEL_OK")
</pallas_src>

<mosaic_0001>
module attributes {stable_mosaic.version = 11 : i64} {
  func.func @_stein_kernel(%arg0: i32, %arg1: memref<1xf32, #tpu.memory_space<smem>>, %arg2: memref<384x16xf32, #tpu.memory_space<vmem>>, %arg3: memref<72x16xf32, #tpu.memory_space<vmem>>, %arg4: memref<32x1xf32, #tpu.memory_space<vmem>>, %arg5: memref<32x1xf32, #tpu.memory_space<vmem>>, %arg6: memref<1x384xf32, #tpu.memory_space<vmem>>) attributes {dimension_semantics = [#tpu.dimension_semantics<parallel>], iteration_bounds = array<i64: 1>, scalar_prefetch = 0 : i64, scratch_operands = 0 : i64, tpu.core_type = #tpu.core_type<tc>, window_params = [{transform_indices = @transform_0, window_bounds = array<i64: 1>}, {transform_indices = @transform_1, window_bounds = array<i64: 384, 16>}, {pipeline_mode = #tpu.pipeline_mode<synchronous>, transform_indices = @transform_2, window_bounds = array<i64: 72, 16>}, {pipeline_mode = #tpu.pipeline_mode<synchronous>, transform_indices = @transform_3, window_bounds = array<i64: 32, 1>}, {pipeline_mode = #tpu.pipeline_mode<synchronous>, transform_indices = @transform_4, window_bounds = array<i64: 32, 1>}, {transform_indices = @transform_5, window_bounds = array<i64: 1, 384>}]} {
    %c0 = arith.constant 0 : index
    %c0_0 = arith.constant 0 : index
    %0 = vector.load %arg2[%c0, %c0_0] : memref<384x16xf32, #tpu.memory_space<vmem>>, vector<384x16xf32>
    %c0_1 = arith.constant 0 : index
    %c0_2 = arith.constant 0 : index
    %1 = vector.load %arg3[%c0_1, %c0_2] : memref<72x16xf32, #tpu.memory_space<vmem>>, vector<72x16xf32>
    %cst = arith.constant dense<0.000000e+00> : vector<72x384xf32>
    %2 = tpu.matmul %1, %0, %cst {dimension_numbers = #tpu.dot_dimension_numbers<[1], [1], [0], [0], [0, 0, 1, 0], [], []>} : vector<72x16xf32>, vector<384x16xf32>, vector<72x384xf32> -> vector<72x384xf32>
    %3 = vector.extract_strided_slice %2 {offsets = [0, 0], sizes = [32, 384], strides = [1, 1]} : vector<72x384xf32> to vector<32x384xf32>
    %c0_3 = arith.constant 0 : index
    %c0_4 = arith.constant 0 : index
    %4 = vector.load %arg4[%c0_3, %c0_4] : memref<32x1xf32, #tpu.memory_space<vmem>>, vector<32x1xf32>
    %5 = vector.broadcast %4 : vector<32x1xf32> to vector<32x384xf32>
    %6 = arith.addf %3, %5 : vector<32x384xf32>
    %7 = vector.extract_strided_slice %2 {offsets = [32, 0], sizes = [32, 384], strides = [1, 1]} : vector<72x384xf32> to vector<32x384xf32>
    %8 = vector.extract_strided_slice %2 {offsets = [64, 0], sizes = [1, 384], strides = [1, 1]} : vector<72x384xf32> to vector<1x384xf32>
    %9 = math.tanh %6 : vector<32x384xf32>
    %c0_5 = arith.constant 0 : index
    %c0_6 = arith.constant 0 : index
    %10 = vector.load %arg5[%c0_5, %c0_6] : memref<32x1xf32, #tpu.memory_space<vmem>>, vector<32x1xf32>
    %11 = arith.mulf %9, %9 : vector<32x384xf32>
    %cst_7 = arith.constant 1.000000e+00 : f32
    %12 = vector.broadcast %cst_7 : f32 to vector<32x384xf32>
    %13 = arith.subf %12, %11 : vector<32x384xf32>
    %14 = vector.broadcast %10 : vector<32x1xf32> to vector<32x384xf32>
    %15 = arith.mulf %14, %13 : vector<32x384xf32>
    %16 = arith.mulf %9, %7 : vector<32x384xf32>
    %17 = arith.subf %15, %16 : vector<32x384xf32>
    %cst_8 = arith.constant dense<0.000000e+00> : vector<384xf32>
    %18 = vector.multi_reduction <add>, %17, %cst_8 [0] : vector<32x384xf32> to vector<384xf32>
    %19 = vector.shape_cast %18 : vector<384xf32> to vector<1x384xf32>
    %c0_9 = arith.constant 0 : index
    %20 = memref.load %arg1[%c0_9] : memref<1xf32, #tpu.memory_space<smem>>
    %21 = arith.subf %19, %8 : vector<1x384xf32>
    %cst_10 = arith.constant 1.000000e+00 : f32
    %22 = vector.broadcast %cst_10 : f32 to vector<1x384xf32>
    %23 = arith.mulf %22, %21 : vector<1x384xf32>
    %24 = vector.broadcast %20 : f32 to vector<1x384xf32>
    %25 = arith.addf %24, %23 : vector<1x384xf32>
    %c0_11 = arith.constant 0 : index
    %c0_12 = arith.constant 0 : index
    %26 = vector.load %arg6[%c0_11, %c0_12] : memref<1x384xf32, #tpu.memory_space<vmem>>, vector<1x384xf32>
    tpu.vector_store %arg6[%c0_11, %c0_12], %25 {strides = array<i32>} : memref<1x384xf32, #tpu.memory_space<vmem>>, vector<1x384xf32>,
    return
  }
  func.func @transform_0(%arg0: i32) -> i32 {
    %c0_i32 = arith.constant 0 : i32
    %c0_i32_0 = arith.constant 0 : i32
    return %c0_i32 : i32
  }
  func.func @transform_1(%arg0: i32) -> (i32, i32) {
    %c0_i32 = arith.constant 0 : i32
    %c0_i32_0 = arith.constant 0 : i32
    return %arg0, %c0_i32 : i32, i32
  }
  func.func @transform_2(%arg0: i32) -> (i32, i32) {
    %c0_i32 = arith.constant 0 : i32
    %c0_i32_0 = arith.constant 0 : i32
    %c0_i32_1 = arith.constant 0 : i32
    return %c0_i32, %c0_i32_0 : i32, i32
  }
  func.func @transform_3(%arg0: i32) -> (i32, i32) {
    %c0_i32 = arith.constant 0 : i32
    %c0_i32_0 = arith.constant 0 : i32
    %c0_i32_1 = arith.constant 0 : i32
    return %c0_i32, %c0_i32_0 : i32, i32
  }
  func.func @transform_4(%arg0: i32) -> (i32, i32) {
    %c0_i32 = arith.constant 0 : i32
    %c0_i32_0 = arith.constant 0 : i32
    %c0_i32_1 = arith.constant 0 : i32
    return %c0_i32, %c0_i32_0 : i32, i32
  }
  func.func @transform_5(%arg0: i32) -> (i32, i32) {
    %c0_i32 = arith.constant 0 : i32
    %c0_i32_0 = arith.constant 0 : i32
    return %c0_i32, %arg0 : i32, i32
  }
}

</mosaic_0001>

<bundles_post_ra>
// kernel: tpu_custom_call.1
= control target key start
LH: loop header
LB: loop body
LE: loop exit
PB: predicated region body
PF: predicated region fallthrough
CT: control target
= control target key end

     0   :  { %vm79_vm0 = vcmask 130048   ;;  %s1067_s0 = inlined_call_operand.<no memory space> [shape: f32[1], index: 0, kind: input, shape index: {}]   ;;  %s1068_s1 = inlined_call_operand.vmem [shape: f32[384,16], index: 1, kind: input, shape index: {}]   ;;  %s1069_s2 = inlined_call_operand.vmem [shape: f32[72,16], index: 2, kind: input, shape index: {}]   ;;  %s1070_s3 = inlined_call_operand.vmem [shape: f32[32,1], index: 3, kind: input, shape index: {}]   ;;  %s1071_s4 = inlined_call_operand.vmem [shape: f32[32,1], index: 4, kind: input, shape index: {}]   ;;  %s1072_s5 = inlined_call_operand.hbm [shape: f32[1,384], index: 5, kind: output, shape index: {}]  }
   0x1   :  { %v37_v0 = vld [vmem:[%s1068_s1 + $0x78] sm:$0xff]  ;;  %v36_v3 = vld [vmem:[%s1068_s1 + $0x70] sm:$0xff]  ;;  %v35_v6 = vld [vmem:[%s1068_s1 + $0x68] sm:$0xff] }
   0x2   :  { %v53_v1 = vld [vmem:[%s1068_s1 + $0xf8] sm:$0xff]  ;;  %581 = vmatpush.xpose.msk.msra.mxu0 %vm79_vm0, %v37_v0  ;;  %v52_v4 = vld [vmem:[%s1068_s1 + $0xf0] sm:$0xff]  ;;  %656 = vmatpush.xpose.msk.msra.mxu3 %vm79_vm0, %v37_v0  ;;  %v51_v7 = vld [vmem:[%s1068_s1 + $0xe8] sm:$0xff] }
   0x3   :  { %v69_v2 = vld [vmem:[%s1068_s1 + $0x178] sm:$0xff]  ;;  %606 = vmatpush.xpose.msk.msra.mxu1 %vm79_vm0, %v53_v1  ;;  %v68_v5 = vld [vmem:[%s1068_s1 + $0x170] sm:$0xff]  ;;  %v67_v8 = vld [vmem:[%s1068_s1 + $0x168] sm:$0xff] }
   0x4   :  { %631 = vmatpush.xpose.msk.msra.mxu2 %vm79_vm0, %v69_v2  ;;  %v34_v9 = vld [vmem:[%s1068_s1 + $0x60] sm:$0xff] }
   0x5   :  { %v50_v10 = vld [vmem:[%s1068_s1 + $0xe0] sm:$0xff] }
   0x6   :  { %582 = vmatpush.xpose.msk.msra.mxu0 %vm79_vm0, %v36_v3  ;;  %657 = vmatpush.xpose.msk.msra.mxu3 %vm79_vm0, %v36_v3  ;;  %v66_v11 = vld [vmem:[%s1068_s1 + $0x160] sm:$0xff] }
   0x7   :  { %607 = vmatpush.xpose.msk.msra.mxu1 %vm79_vm0, %v52_v4 }
   0x8   :  { %632 = vmatpush.xpose.msk.msra.mxu2 %vm79_vm0, %v68_v5 }
   0xa   :  { %583 = vmatpush.xpose.msk.msra.mxu0 %vm79_vm0, %v35_v6  ;;  %658 = vmatpush.xpose.msk.msra.mxu3 %vm79_vm0, %v35_v6 }
   0xb   :  { %608 = vmatpush.xpose.msk.msra.mxu1 %vm79_vm0, %v51_v7 }
   0xc   :  { %633 = vmatpush.xpose.msk.msra.mxu2 %vm79_vm0, %v67_v8 }
   0xd   :  { %11 = vsyncpa [#allocation4], 0  ;;  %v33_v12 = vld [vmem:[%s1068_s1 + $0x58] sm:$0xff]  ;;  %v32_v15 = vld [vmem:[%s1068_s1 + $0x50] sm:$0xff]  ;;  %v727_v37 = vmov 0   ;;  %vm555_vm1 = vcmask 1040384  }
   0xe   :  { %584 = vmatpush.xpose.msk.msra.mxu0 %vm79_vm0, %v34_v9  ;;  %v49_v13 = vld [vmem:[%s1068_s1 + $0xd8] sm:$0xff]  ;;  %659 = vmatpush.xpose.msk.msra.mxu3 %vm79_vm0, %v34_v9  ;;  %v48_v16 = vld [vmem:[%s1068_s1 + $0xd0] sm:$0xff]  ;;  %v31_v18 = vld [vmem:[%s1068_s1 + $0x48] sm:$0xff]  ;;  %s728_s21 = smov [#allocation3]   ;;  %s572_s24 = sshll.u32 %s1072_s5, 4  ;;  %vm557_vm2 = vcmask 1041408   ;;  %s573_s24 = int_to_ptr.hbm [resolvable:$true] %s572_s24 }
   0xf   :  { %609 = vmatpush.xpose.msk.msra.mxu1 %vm79_vm0, %v50_v10  ;;  %v65_v14 = vld [vmem:[%s1068_s1 + $0x158] sm:$0xff]  ;;  %v64_v17 = vld [vmem:[%s1068_s1 + $0x150] sm:$0xff]  ;;  %v47_v19 = vld [vmem:[%s1068_s1 + $0xc8] sm:$0xff]  ;;  %674 = vset.pattern.permute.xlu0 %v727_v37 }
  0x10   :  { %634 = vmatpush.xpose.msk.msra.mxu2 %vm79_vm0, %v66_v11  ;;  %v63_v20 = vld [vmem:[%s1068_s1 + $0x148] sm:$0xff]  ;;  %v30_v21 = vld [vmem:[%s1068_s1 + $0x40] sm:$0xff]  ;;  %v29_v24 = vld [vmem:[%s1068_s1 + $0x38] sm:$0xff]  ;;  %675 = vset.pattern.permute.xlu1 %v727_v37 }
  0x11   :  { %v46_v22 = vld [vmem:[%s1068_s1 + $0xc0] sm:$0xff]  ;;  %v45_v25 = vld [vmem:[%s1068_s1 + $0xb8] sm:$0xff]  ;;  %v28_v27 = vld [vmem:[%s1068_s1 + $0x30] sm:$0xff]  ;;  %676 = vset.pattern.permute.xlu2 %v727_v37 }
  0x12   :  { %585 = vmatpush.xpose.msk.msra.mxu0 %vm79_vm0, %v33_v12  ;;  %660 = vmatpush.xpose.msk.msra.mxu3 %vm79_vm0, %v33_v12  ;;  %v62_v23 = vld [vmem:[%s1068_s1 + $0x140] sm:$0xff]  ;;  %v61_v26 = vld [vmem:[%s1068_s1 + $0x138] sm:$0xff]  ;;  %v44_v28 = vld [vmem:[%s1068_s1 + $0xb0] sm:$0xff] }
  0x13   :  { %610 = vmatpush.xpose.msk.msra.mxu1 %vm79_vm0, %v49_v13  ;;  %v60_v29 = vld [vmem:[%s1068_s1 + $0x130] sm:$0xff]  ;;  %v27_v30 = vld [vmem:[%s1068_s1 + $0x28] sm:$0xff]  ;;  %v383_v33 = vld [vmem:[%s1070_s3] sm:$0xff] }
  0x14   :  { %635 = vmatpush.xpose.msk.msra.mxu2 %vm79_vm0, %v65_v14  ;;  %v43_v31 = vld [vmem:[%s1068_s1 + $0xa8] sm:$0xff]  ;;  %v26_v34 = vld [vmem:[%s1068_s1 + $0x20] sm:$0xff]  ;;  %389 = vperm.xlu0 %674, %v383_v33   ;;  %v25_v38 = vld [vmem:[%s1068_s1 + $0x18] sm:$0xff] }
  0x15   :  { %v59_v32 = vld [vmem:[%s1068_s1 + $0x128] sm:$0xff]  ;;  %v42_v35 = vld [vmem:[%s1068_s1 + $0xa0] sm:$0xff]  ;;  %v41_v39 = vld [vmem:[%s1068_s1 + $0x98] sm:$0xff] }
  0x16   :  { %586 = vmatpush.xpose.msk.msra.mxu0 %vm79_vm0, %v32_v15  ;;  %661 = vmatpush.xpose.msk.msra.mxu3 %vm79_vm0, %v32_v15  ;;  %v58_v36 = vld [vmem:[%s1068_s1 + $0x120] sm:$0xff]  ;;  %v57_v40 = vld [vmem:[%s1068_s1 + $0x118] sm:$0xff]  ;;  %v384_v41 = vld [vmem:[%s1070_s3 + $0x8] sm:$0xff] }
  0x17   :  { %611 = vmatpush.xpose.msk.msra.mxu1 %vm79_vm0, %v48_v16  ;;  %v24_v42 = vld [vmem:[%s1068_s1 + $0x10] sm:$0xff]  ;;  %v23_v45 = vld [vmem:[%s1068_s1 + $0x8] sm:$0xff]  ;;  %v22_v49 = vld [vmem:[%s1068_s1] sm:$0xff] }
  0x18   :  { %636 = vmatpush.xpose.msk.msra.mxu2 %vm79_vm0, %v64_v17  ;;  %v40_v43 = vld [vmem:[%s1068_s1 + $0x90] sm:$0xff]  ;;  %v39_v46 = vld [vmem:[%s1068_s1 + $0x88] sm:$0xff]  ;;  %v38_v50 = vld [vmem:[%s1068_s1 + $0x80] sm:$0xff] }
  0x19   :  { %v56_v44 = vld [vmem:[%s1068_s1 + $0x110] sm:$0xff]  ;;  %v55_v47 = vld [vmem:[%s1068_s1 + $0x108] sm:$0xff]  ;;  %v54_v51 = vld [vmem:[%s1068_s1 + $0x100] sm:$0xff]  ;;  %s570_s1 = sshll.u32 %s728_s21, 4  ;;  %s571_s1 = int_to_ptr.vmem [resolvable:$true] %s570_s1 }
  0x1a   :  { %587 = vmatpush.xpose.msk.msra.mxu0 %vm79_vm0, %v31_v18  ;;  %662 = vmatpush.xpose.msk.msra.mxu3 %vm79_vm0, %v31_v18  ;;  %v385_v48 = vld [vmem:[%s1070_s3 + $0x10] sm:$0xff]  ;;  %v70_v52 = vld [vmem:[%s1069_s2] sm:$0xff]  ;;  %v77_v53 = vld [vmem:[%s1069_s2 + $0x38] sm:$0xff] }
  0x1b   :  { %612 = vmatpush.xpose.msk.msra.mxu1 %vm79_vm0, %v47_v19  ;;  %399 = vperm.xlu1 %675, %v385_v48   ;;  %v386_v54 = vld [vmem:[%s1070_s3 + $0x18] sm:$0xff]  ;;  %v71_v55 = vld [vmem:[%s1069_s2 + $0x8] sm:$0xff]  ;;  %v433_v56 = vld [vmem:[%s1071_s4 + $0x10] sm:$0xff] }
  0x1c   :  { %637 = vmatpush.xpose.msk.msra.mxu2 %vm79_vm0, %v63_v20  ;;  %394 = vperm.xlu0 %674, %v384_v41   ;;  %v72_v57 = vld [vmem:[%s1069_s2 + $0x10] sm:$0xff]  ;;  %v434_v58 = vld [vmem:[%s1071_s4 + $0x18] sm:$0xff]  ;;  %v431_v59 = vld [vmem:[%s1071_s4] sm:$0xff] }
  0x1d   :  { %461 = vperm.xlu2 %676, %v431_v59   ;;  %v73_v60 = vld [vmem:[%s1069_s2 + $0x18] sm:$0xff]  ;;  %v432_v61 = vld [vmem:[%s1071_s4 + $0x8] sm:$0xff]  ;;  %v78_v62 = vld [vmem:[%s1069_s2 + $0x40] sm:$0xff] }
  0x1e   :  { %588 = vmatpush.xpose.msk.msra.mxu0 %vm79_vm0, %v30_v21  ;;  %663 = vmatpush.xpose.msk.msra.mxu3 %vm79_vm0, %v30_v21  ;;  %v74_v63 = vld [vmem:[%s1069_s2 + $0x20] sm:$0xff]  ;;  %v75_v0 = vld [vmem:[%s1069_s2 + $0x28] sm:$0xff]  ;;  %v76_v1 = vld [vmem:[%s1069_s2 + $0x30] sm:$0xff] }
  0x1f   :  { %613 = vmatpush.xpose.msk.msra.mxu1 %vm79_vm0, %v46_v22 }
  0x20   :  { %638 = vmatpush.xpose.msk.msra.mxu2 %vm79_vm0, %v62_v23 }
  0x22   :  { %589 = vmatpush.xpose.msk.msra.mxu0 %vm79_vm0, %v29_v24  ;;  %664 = vmatpush.xpose.msk.msra.mxu3 %vm79_vm0, %v29_v24 }
  0x23   :  { %614 = vmatpush.xpose.msk.msra.mxu1 %vm79_vm0, %v45_v25  ;;  %404 = vperm.xlu1 %675, %v386_v54  }
  0x24   :  { %639 = vmatpush.xpose.msk.msra.mxu2 %vm79_vm0, %v61_v26  ;;  %471 = vperm.xlu0 %674, %v433_v56  }
  0x25   :  { %466 = vperm.xlu2 %676, %v432_v61  }
  0x26   :  { %590 = vmatpush.xpose.msk.msra.mxu0 %vm79_vm0, %v28_v27  ;;  %665 = vmatpush.xpose.msk.msra.mxu3 %vm79_vm0, %v28_v27 }
  0x27   :  { %615 = vmatpush.xpose.msk.msra.mxu1 %vm79_vm0, %v44_v28 }
  0x28   :  { %640 = vmatpush.xpose.msk.msra.mxu2 %vm79_vm0, %v60_v29 }
  0x2a   :  { %591 = vmatpush.xpose.msk.msra.mxu0 %vm79_vm0, %v27_v30  ;;  %666 = vmatpush.xpose.msk.msra.mxu3 %vm79_vm0, %v27_v30 }
  0x2b   :  { %616 = vmatpush.xpose.msk.msra.mxu1 %vm79_vm0, %v43_v31  ;;  %476 = vperm.xlu1 %675, %v434_v58  }
  0x2c   :  { %641 = vmatpush.xpose.msk.msra.mxu2 %vm79_vm0, %v59_v32 }
  0x2e   :  { %592 = vmatpush.xpose.msk.msra.mxu0 %vm79_vm0, %v26_v34  ;;  %667 = vmatpush.xpose.msk.msra.mxu3 %vm79_vm0, %v26_v34 }
  0x2f   :  { %617 = vmatpush.xpose.msk.msra.mxu1 %vm79_vm0, %v42_v35 }
  0x30   :  { %642 = vmatpush.xpose.msk.msra.mxu2 %vm79_vm0, %v58_v36 }
  0x32   :  { %593 = vmatpush.xpose.msk.msra.mxu0 %vm79_vm0, %v25_v38  ;;  %668 = vmatpush.xpose.msk.msra.mxu3 %vm79_vm0, %v25_v38 }
  0x33   :  { %618 = vmatpush.xpose.msk.msra.mxu1 %vm79_vm0, %v41_v39 }
  0x34   :  { %643 = vmatpush.xpose.msk.msra.mxu2 %vm79_vm0, %v57_v40 }
  0x36   :  { %594 = vmatpush.xpose.msk.msra.mxu0 %vm79_vm0, %v24_v42  ;;  %669 = vmatpush.xpose.msk.msra.mxu3 %vm79_vm0, %v24_v42 }
  0x37   :  { %619 = vmatpush.xpose.msk.msra.mxu1 %vm79_vm0, %v40_v43 }
  0x38   :  { %644 = vmatpush.xpose.msk.msra.mxu2 %vm79_vm0, %v56_v44 }
  0x3a   :  { %595 = vmatpush.xpose.msk.msra.mxu0 %vm79_vm0, %v23_v45  ;;  %670 = vmatpush.xpose.msk.msra.mxu3 %vm79_vm0, %v23_v45 }
  0x3b   :  { %620 = vmatpush.xpose.msk.msra.mxu1 %vm79_vm0, %v39_v46 }
  0x3c   :  { %645 = vmatpush.xpose.msk.msra.mxu2 %vm79_vm0, %v55_v47 }
  0x3e   :  { %596 = vmatpush.xpose.msk.msra.mxu0 %vm79_vm0, %v22_v49  ;;  %671 = vmatpush.xpose.msk.msra.mxu3 %vm79_vm0, %v22_v49 }
  0x3f   :  { %621 = vmatpush.xpose.msk.msra.mxu1 %vm79_vm0, %v38_v50 }
  0x40   :  { %646 = vmatpush.xpose.msk.msra.mxu2 %vm79_vm0, %v54_v51 }
  0x41   :  { %597 = vmatmul.msk.f32.vlgmr.msra.gmra.mxu0 %vm79_vm0, %v70_v52  ;;  %604 = vmatmul.msk.f32.vlgmr.msra.gmra.mxu3 %vm79_vm0, %v77_v53 }
  0x42   :  { %622 = vmatmul.msk.f32.vlgmr.msra.gmra.mxu1 %vm79_vm0, %v70_v52 }
  0x43   :  { %647 = vmatmul.msk.f32.vlgmr.msra.gmra.mxu2 %vm79_vm0, %v70_v52 }
  0x49   :  { %598 = vmatmul.msk.f32.gmra.mxu0 %vm79_vm0, %v71_v55  ;;  %605 = vmatmul.msk.f32.gmra.mxu3 %vm79_vm0, %v78_v62 }
  0x4a   :  { %623 = vmatmul.msk.f32.gmra.mxu1 %vm79_vm0, %v71_v55 }
  0x4b   :  { %648 = vmatmul.msk.f32.gmra.mxu2 %vm79_vm0, %v71_v55 }
  0x51   :  { %599 = vmatmul.msk.f32.gmra.mxu0 %vm79_vm0, %v72_v57 }
  0x52   :  { %624 = vmatmul.msk.f32.gmra.mxu1 %vm79_vm0, %v72_v57 }
  0x53   :  { %649 = vmatmul.msk.f32.gmra.mxu2 %vm79_vm0, %v72_v57 }
  0x59   :  { %600 = vmatmul.msk.f32.gmra.mxu0 %vm79_vm0, %v73_v60 }
  0x5a   :  { %625 = vmatmul.msk.f32.gmra.mxu1 %vm79_vm0, %v73_v60 }
  0x5b   :  { %650 = vmatmul.msk.f32.gmra.mxu2 %vm79_vm0, %v73_v60 }
  0x61   :  { %601 = vmatmul.msk.f32.gmra.mxu0 %vm79_vm0, %v74_v63 }
  0x62   :  { %626 = vmatmul.msk.f32.gmra.mxu1 %vm79_vm0, %v74_v63 }
  0x63   :  { %651 = vmatmul.msk.f32.gmra.mxu2 %vm79_vm0, %v74_v63 }
  0x69   :  { %602 = vmatmul.msk.f32.gmra.mxu0 %vm79_vm0, %v75_v0 }
  0x6a   :  { %627 = vmatmul.msk.f32.gmra.mxu1 %vm79_vm0, %v75_v0 }
  0x6b   :  { %652 = vmatmul.msk.f32.gmra.mxu2 %vm79_vm0, %v75_v0 }
  0x71   :  { %603 = vmatmul.msk.f32.gmra.mxu0 %vm79_vm0, %v76_v1 }
  0x72   :  { %628 = vmatmul.msk.f32.gmra.mxu1 %vm79_vm0, %v76_v1 }
  0x73   :  { %653 = vmatmul.msk.f32.gmra.mxu2 %vm79_vm0, %v76_v1 }
  0x77   :  { %v1047_v28 = vpop.permute.xlu2 %461 }
  0x7a   :  { %629 = vmatmul.msk.f32.gmra.mxu1 %vm79_vm0, %v77_v53 }
  0x7b   :  { %654 = vmatmul.msk.f32.gmra.mxu2 %vm79_vm0, %v77_v53 }
  0x7f   :  { %v467_v52 = vpop.permute.xlu2 %466 }
  0x82   :  { %630 = vmatmul.msk.f32.gmra.mxu1 %vm79_vm0, %v78_v62 }
  0x83   :  { %655 = vmatmul.msk.f32.gmra.mxu2 %vm79_vm0, %v78_v62 }
  0x86   :  { %v390_v7 = vpop.permute.xlu0 %389 }
  0x8d   :  { %v400_v9 = vpop.permute.xlu1 %399 }
  0x8e   :  { %v395_v12 = vpop.permute.xlu0 %394 }
  0x95   :  { %v405_v18 = vpop.permute.xlu1 %404 }
  0x96   :  { %v472_v1 = vpop.permute.xlu0 %471 }
  0x9d   :  { %v1052_v62 = vpop.permute.xlu1 %476 }
  0xbe   :  { %v268_v2 = vpop.f32.mrf.mxu0 }
  0xbf   :  { %v312_v3 = vpop.f32.mrf.mxu1  ;;  %v407_v17 = vadd.f32 %v390_v7, %v268_v2 }
  0xc0   :  { %v408_v22 = vadd.f32 %v390_v7, %v312_v3 }
  0xc4   :  { %v289_v58 = vpop.f32.mrf.mxu3 }
  0xc6   :  { %v356_v4 = vpop.f32.mrf.mxu2  ;;  %v271_v5 = vpop.f32.mrf.mxu0 }
  0xc7   :  { %v315_v6 = vpop.f32.mrf.mxu1  ;;  %v410_v14 = vadd.f32 %v395_v12, %v271_v5  ;;  %v409_v35 = vadd.f32 %v390_v7, %v356_v4 }
  0xc8   :  { %v411_v21 = vadd.f32 %v395_v12, %v315_v6 }
  0xc9   :  { %677 = vtanh.f32 %v410_v14 }
  0xca   :  { %679 = vtanh.f32 %v407_v17 }
  0xce   :  { %v359_v8 = vpop.f32.mrf.mxu2  ;;  %v274_v10 = vpop.f32.mrf.mxu0 }
  0xcf   :  { %v318_v11 = vpop.f32.mrf.mxu1  ;;  %v413_v19 = vadd.f32 %v400_v9, %v274_v10  ;;  %v678_v27 = vpop.eup %677  ;;  %v412_v32 = vadd.f32 %v395_v12, %v359_v8 }
  0xd0   :  { %v414_v23 = vadd.f32 %v400_v9, %v318_v11  ;;  %v680_v29 = vpop.eup %679  ;;  %v438_v33 = vmul.f32 %v678_v27, %v678_v27 }
  0xd1   :  { %681 = vtanh.f32 %v413_v19  ;;  %v435_v36 = vmul.f32 %v680_v29, %v680_v29 }
  0xd2   :  { %v450_v45 = vsub.f32 1.0, %v438_v33 }
  0xd3   :  { %v447_v47 = vsub.f32 1.0, %v435_v36 }
  0xd4   :  { %v482_v56 = vmul.f32 %v467_v52, %v450_v45 }
  0xd5   :  { %v479_v60 = vmul.f32 %v1047_v28, %v447_v47 }
  0xd6   :  { %v362_v13 = vpop.f32.mrf.mxu2  ;;  %v277_v15 = vpop.f32.mrf.mxu0 }
  0xd7   :  { %v321_v16 = vpop.f32.mrf.mxu1  ;;  %v416_v20 = vadd.f32 %v405_v18, %v277_v15  ;;  %v682_v31 = vpop.eup %681  ;;  %v415_v38 = vadd.f32 %v400_v9, %v362_v13 }
  0xd8   :  { %v417_v30 = vadd.f32 %v405_v18, %v321_v16  ;;  %v441_v41 = vmul.f32 %v682_v31, %v682_v31 }
  0xd9   :  { %683 = vtanh.f32 %v416_v20 }
  0xda   :  { %685 = vtanh.f32 %v411_v21  ;;  %v453_v55 = vsub.f32 1.0, %v441_v41 }
  0xdb   :  { %687 = vtanh.f32 %v408_v22 }
  0xdc   :  { %689 = vtanh.f32 %v414_v23  ;;  %v485_v7 = vmul.f32 %v472_v1, %v453_v55 }
  0xdd   :  { %691 = vtanh.f32 %v417_v30 }
  0xde   :  { %v365_v24 = vpop.f32.mrf.mxu2  ;;  %v280_v25 = vpop.f32.mrf.mxu0  ;;  %693 = vtanh.f32 %v412_v32 }
  0xdf   :  { %v1045_v26 = vpop.f32.mrf.mxu1  ;;  %v684_v34 = vpop.eup %683  ;;  %695 = vtanh.f32 %v409_v35  ;;  %v418_v50 = vadd.f32 %v405_v18, %v365_v24  ;;  %v491_v53 = vmul.f32 %v680_v29, %v280_v25 }
  0xe0   :  { %v686_v37 = vpop.eup %685  ;;  %v444_v46 = vmul.f32 %v684_v34, %v684_v34  ;;  %697 = vtanh.f32 %v415_v38  ;;  %v500_v8 = vmul.f32 %v684_v34, %v289_v58 }
  0xe1   :  { %v688_v40 = vpop.eup %687  ;;  %v439_v48 = vmul.f32 %v686_v37, %v686_v37  ;;  %699 = vtanh.f32 %v418_v50  ;;  %v503_v5 = vsub.f32 %v479_v60, %v491_v53 }
  0xe2   :  { %v690_v44 = vpop.eup %689  ;;  %v436_v49 = vmul.f32 %v688_v40, %v688_v40  ;;  %v456_v57 = vsub.f32 1.0, %v444_v46  ;;  %v492_v18 = vmul.f32 %v688_v40, %v1045_v26 }
  0xe3   :  { %v442_v54 = vmul.f32 %v690_v44, %v690_v44  ;;  %v692_v59 = vpop.eup %691  ;;  %v451_v61 = vsub.f32 1.0, %v439_v48 }
  0xe4   :  { %v694_v63 = vpop.eup %693  ;;  %v448_v0 = vsub.f32 1.0, %v436_v49  ;;  %v445_v12 = vmul.f32 %v692_v59, %v692_v59  ;;  %v488_v13 = vmul.f32 %v1052_v62, %v456_v57 }
  0xe5   :  { %v696_v4 = vpop.eup %695  ;;  %v454_v6 = vsub.f32 1.0, %v442_v54  ;;  %v440_v16 = vmul.f32 %v694_v63, %v694_v63  ;;  %v483_v17 = vmul.f32 %v467_v52, %v451_v61 }
  0xe6   :  { %v1049_v39 = vpop.f32.mrf.mxu2  ;;  %v283_v42 = vpop.f32.mrf.mxu0  ;;  %v437_v22 = vmul.f32 %v696_v4, %v696_v4  ;;  %v480_v23 = vmul.f32 %v1047_v28, %v448_v0  ;;  %v457_v29 = vsub.f32 1.0, %v445_v12  ;;  %v512_v30 = vsub.f32 %v488_v13, %v500_v8 }
  0xe7   :  { %v327_v43 = vpop.f32.mrf.mxu1  ;;  %v494_v51 = vmul.f32 %v678_v27, %v283_v42  ;;  %v698_v11 = vpop.eup %697  ;;  %v486_v25 = vmul.f32 %v472_v1, %v454_v6  ;;  %v452_v34 = vsub.f32 1.0, %v440_v16  ;;  %v493_v48 = vmul.f32 %v696_v4, %v1049_v39 }
  0xe8   :  { %v495_v14 = vmul.f32 %v686_v37, %v327_v43  ;;  %v443_v24 = vmul.f32 %v698_v11, %v698_v11  ;;  %v700_v27 = vpop.eup %699  ;;  %v504_v35 = vsub.f32 %v480_v23, %v492_v18  ;;  %v449_v38 = vsub.f32 1.0, %v437_v22 }
  0xe9   :  { %v506_v2 = vsub.f32 %v482_v56, %v494_v51  ;;  %v446_v40 = vmul.f32 %v700_v27, %v700_v27  ;;  %v489_v43 = vmul.f32 %v1052_v62, %v457_v29  ;;  %v484_v47 = vmul.f32 %v467_v52, %v452_v34 }
  0xea   :  { %v507_v32 = vsub.f32 %v483_v17, %v495_v14  ;;  %v455_v26 = vsub.f32 1.0, %v443_v24  ;;  %v481_v53 = vmul.f32 %v1047_v28, %v449_v38  ;;  %v292_v17 = vpop.f32.mrf.mxu3  ;;  %v546_v18 = vstv %s1067_s0 }
  0xeb   :  { %v515_v19 = vadd.f32 %v506_v2, %v503_v5  ;;  %v458_v55 = vsub.f32 1.0, %v446_v40 }
  0xec   :  { %v487_v54 = vmul.f32 %v472_v1, %v455_v26  ;;  %v505_v60 = vsub.f32 %v481_v53, %v493_v48 }
  0xee   :  { %v371_v3 = vpop.f32.mrf.mxu2  ;;  %v286_v9 = vpop.f32.mrf.mxu0 }
  0xef   :  { %v330_v10 = vpop.f32.mrf.mxu1  ;;  %v497_v15 = vmul.f32 %v682_v31, %v286_v9  ;;  %v496_v41 = vmul.f32 %v694_v63, %v371_v3 }
  0xf0   :  { %v498_v21 = vmul.f32 %v690_v44, %v330_v10  ;;  %v524_v44 = vadd.f32 %v507_v32, %v504_v35 }
  0xf1   :  { %v509_v20 = vsub.f32 %v485_v7, %v497_v15  ;;  %v508_v56 = vsub.f32 %v484_v47, %v496_v41 }
  0xf2   :  { %v510_v36 = vsub.f32 %v486_v25, %v498_v21  ;;  %v560_v25 = vlaneseq }
  0xf3   :  { %v516_v33 = vadd.f32 %v515_v19, %v509_v20  ;;  %v533_v2 = vadd.f32 %v508_v56, %v505_v60 }
  0xf4   :  { %v525_v50 = vadd.f32 %v524_v44, %v510_v36  ;;  %vm562_vm3 = vcmp.lt.s32.totalorder %v560_v25, 384 }
  0xf5   :  { %v517_v31 = vadd.f32 %v516_v33, %v512_v30 }
  0xf6   :  { %v374_v37 = vpop.f32.mrf.mxu2 }
  0xf7   :  { %v333_v42 = vpop.f32.mrf.mxu1  ;;  %v518_v46 = vrot.slane %v517_v31, 4  ;;  %v499_v49 = vmul.f32 %v698_v11, %v374_v37 }
  0xf8   :  { %v501_v45 = vmul.f32 %v692_v59, %v333_v42  ;;  %v490_v59 = vmul.f32 %v1052_v62, %v458_v55 }
  0xf9   :  { %v519_v58 = vadd.f32 %v518_v46, %v517_v31  ;;  %v511_v61 = vsub.f32 %v487_v54, %v499_v49 }
  0xfa   :  { %v513_v51 = vsub.f32 %v489_v43, %v501_v45 }
  0xfb   :  { %v520_v3 = vrot.slane %v519_v58, 2  ;;  %v534_v4 = vadd.f32 %v533_v2, %v511_v61 }
  0xfc   :  { %v526_v57 = vadd.f32 %v525_v50, %v513_v51 }
  0xfd   :  { %v521_v28 = vadd.f32 %v520_v3, %v519_v58 }
  0xfe   :  { %v527_v63 = vrot.slane %v526_v57, 4  ;;  %v377_v0 = vpop.f32.mrf.mxu2 }
  0xff   :  { %v502_v52 = vmul.f32 %v700_v27, %v377_v0  ;;  %v336_v10 = vpop.f32.mrf.mxu1  ;;  %v522_v12 = vrot.slane %v521_v28, 1 }
 0x100   :  { %v528_v39 = vadd.f32 %v527_v63, %v526_v57 }
 0x101   :  { %v514_v5 = vsub.f32 %v490_v59, %v502_v52  ;;  %v523_v62 = vadd.f32 %v522_v12, %v521_v28 }
 0x102   :  { %v529_v6 = vrot.slane %v528_v39, 2 }
 0x103   :  { %v535_v7 = vadd.f32 %v534_v4, %v514_v5  ;;  %v543_v23 = vsub.f32 %v523_v62, %v292_v17 }
 0x104   :  { %v530_v1 = vadd.f32 %v529_v6, %v528_v39 }
 0x105   :  { %v536_v8 = vrot.slane %v535_v7, 4  ;;  %v547_v30 = vadd.f32 %v546_v18, %v543_v23 }
 0x106   :  { %v531_v9 = vrot.slane %v530_v1, 1  ;;  %v380_v21 = vpop.f32.mrf.mxu2 }
 0x107   :  { %v537_v11 = vadd.f32 %v536_v8, %v535_v7 }
 0x108   :  { %v532_v13 = vadd.f32 %v531_v9, %v530_v1 }
 0x109   :  { %v538_v14 = vrot.slane %v537_v11, 2 }
 0x10a   :  { %v544_v15 = vsub.f32 %v532_v13, %v336_v10 }
 0x10b   :  { %v539_v16 = vadd.f32 %v538_v14, %v537_v11 }
 0x10c   :  { %v548_v20 = vadd.f32 %v546_v18, %v544_v15 }
 0x10d   :  { %v540_v19 = vrot.slane %v539_v16, 1 }
 0x10e   :  { %v553_v27 = vrot.slane %v548_v20, 7 }
 0x10f   :  { %v541_v22 = vadd.f32 %v540_v19, %v539_v16 }
 0x110   :  { %v556_v33 = vsel %vm555_vm1, %v547_v30, %v553_v27 }
 0x111   :  { %v545_v24 = vsub.f32 %v541_v22, %v380_v21 }
 0x113   :  { %v549_v29 = vadd.f32 %v546_v18, %v545_v24 }
 0x115   :  { %v554_v32 = vrot.slane %v549_v29, 6 }
 0x117   :  { %v558_v34 = vsel %vm557_vm2, %v556_v33, %v554_v32 }
 0x118   :  { %564 = vst.msk [vmem:[#allocation3] sm:$0x7] %vm562_vm3, %v558_v34 }
 0x119   :  { %575 = dma.vmem_to_hbm [thread:$0]  %s571_s1, 48, %s573_s24, [#allocation4]  }
 0x11a   :  { %725 = dma.done.wait [#allocation4], 48  }
 0x11b   :  { %726 = vsyncadd [#allocation4], 4294967248 }
 0x11c   :  { %580 = vsyncpa [#allocation4], 1 }

</bundles_post_ra>
